<compile_context>
chip_gen: v5e
topology: v5e:2x2
jax: 0.10.0
libtpu: 0.0.40
codegen_flags: <defaults>
</compile_context>

<pallas_src>
import jax
import jax.numpy as jnp
from jax.experimental import pallas as pl
from jax.experimental.pallas import tpu as pltpu


def make_mhsa_kernel(num_heads: int):
    H = num_heads

    def mhsa_kernel(x_ref, wqkv_ref, bqkv_ref, wproj_ref, bproj_ref, o_ref):
        # x_ref: (N, C) — the leading batch dim is Squeezed away by the BlockSpec.
        N, C = x_ref.shape
        D = C // H
        scale = 1.0 / (D ** 0.5)

        # ---- QKV projection: bf16 operands on the MXU, f32 accumulation ----
        x16 = x_ref[...].astype(jnp.bfloat16)
        qkv = jnp.dot(x16, wqkv_ref[...],
                      preferred_element_type=jnp.float32) + bqkv_ref[...]    # (N, 3C) f32

        # ---- split into head-major (H, N, D) once (the 3C axis factors as [3, H, D]) ----
        def heads(base):
            return jnp.stack(
                [qkv[:, base + h * D: base + (h + 1) * D] for h in range(H)], axis=0)

        q = heads(0 * C) * scale       # pre-scale q: O(N*C) work instead of O(N^2)
        k = heads(1 * C)
        v = heads(2 * C)

        # ---- scores: head-batched matmul, contraction on D (no explicit k^T) ----
        s = jnp.einsum('hnd,hmd->hnm',
                       q.astype(jnp.bfloat16), k.astype(jnp.bfloat16),
                       preferred_element_type=jnp.float32)                   # (H, N, N)

        # ---- softmax strictly in f32; EUP reciprocal instead of a VALU divide ----
        s = s - jnp.max(s, axis=-1, keepdims=True)
        e = jnp.exp(s)
        attn = e * pl.reciprocal(jnp.sum(e, axis=-1, keepdims=True), approx=True)

        # ---- context: head-batched matmul ----
        ctx = jnp.einsum('hnm,hmd->hnd',
                         attn.astype(jnp.bfloat16), v.astype(jnp.bfloat16),
                         preferred_element_type=jnp.float32)                 # (H, N, D)

        # ---- output projection: accumulate per-head partials (no lane-axis concat) ----
        acc = jnp.zeros((N, C), jnp.float32)
        for h in range(H):             # H is small; per-iteration live set is just (N, C)
            acc = acc + jnp.dot(ctx[h].astype(jnp.bfloat16), wproj_ref[h],
                                preferred_element_type=jnp.float32)
        o_ref[...] = (acc + bproj_ref[...]).astype(o_ref.dtype)

    return mhsa_kernel


def multi_head_self_attention(x, wqkv, bqkv, wproj, bproj, num_heads):
    """x: (B, N, C).  wqkv: (3C, C), bqkv: (3C,), wproj: (C, C), bproj: (C,)
    (PyTorch nn.Linear weight layout).  Returns (B, N, C)."""
    B, N, C = x.shape
    H = num_heads
    assert C % H == 0
    D = C // H

    # Pre-transpose weights to (in, out) and cast to bf16 for full MXU rate.
    wqkv_t = wqkv.T.astype(jnp.bfloat16)                        # (C, 3C)
    wproj_hd = wproj.T.reshape(H, D, C).astype(jnp.bfloat16)    # per-head (D, C) slabs
    bqkv_2d = bqkv.reshape(1, 3 * C).astype(jnp.float32)
    bproj_2d = bproj.reshape(1, C).astype(jnp.float32)

    kernel = make_mhsa_kernel(num_heads)

    return pl.pallas_call(
        kernel,
        out_shape=jax.ShapeDtypeStruct((B, N, C), x.dtype),
        grid_spec=pltpu.PrefetchScalarGridSpec(
            num_scalar_prefetch=0,
            grid=(B,),
            in_specs=[
                pl.BlockSpec((pl.Squeezed(), N, C), lambda b: (b, 0, 0)),   # x (per-batch)
                pl.BlockSpec((C, 3 * C), lambda b: (0, 0)),                 # Wqkv^T (bf16)
                pl.BlockSpec((1, 3 * C), lambda b: (0, 0)),                 # bqkv   (f32)
                pl.BlockSpec((H, D, C), lambda b: (0, 0, 0)),               # Wproj^T per head (bf16)
                pl.BlockSpec((1, C), lambda b: (0, 0)),                     # bproj  (f32)
            ],
            out_specs=pl.BlockSpec((pl.Squeezed(), N, C), lambda b: (b, 0, 0)),
        ),
        compiler_params=pltpu.CompilerParams(
            dimension_semantics=("parallel",),
            vmem_limit_bytes=64 * 1024 * 1024,
        ),
    )(x, wqkv_t, bqkv_2d, wproj_hd, bproj_2d)


def mhsa_reference(x, wqkv, bqkv, wproj, bproj, num_heads):
    """Plain-JAX f32 reference mirroring the PyTorch forward exactly."""
    B, N, C = x.shape
    D = C // num_heads
    qkv = x @ wqkv.T + bqkv                                     # (B, N, 3C)
    qkv = qkv.reshape(B, N, 3, num_heads, D).transpose(2, 0, 3, 1, 4)
    q, k, v = qkv[0], qkv[1], qkv[2]                            # (B, H, N, D)
    scores = jnp.einsum("bhnd,bhmd->bhnm", q, k) / (D ** 0.5)
    attn = jax.nn.softmax(scores, axis=-1)
    ctx = jnp.einsum("bhnm,bhmd->bhnd", attn, v)                # (B, H, N, D)
    ctx = ctx.transpose(0, 2, 1, 3).reshape(B, N, C)
    return ctx @ wproj.T + bproj


if __name__ == "__main__":
    B, N, C = 2, 8, 32
    num_heads = 4

    key = jax.random.PRNGKey(0)
    kx, kw1, kb1, kw2, kb2 = jax.random.split(key, 5)

    x = jax.random.normal(kx, (B, N, C), dtype=jnp.float32)
    # nn.Linear(embed_dim, 3*embed_dim): weight (3C, C), bias (3C,)
    wqkv = jax.random.normal(kw1, (3 * C, C), dtype=jnp.float32) * 0.1
    bqkv = jax.random.normal(kb1, (3 * C,), dtype=jnp.float32) * 0.1
    # nn.Linear(embed_dim, embed_dim): weight (C, C), bias (C,)
    wproj = jax.random.normal(kw2, (C, C), dtype=jnp.float32) * 0.1
    bproj = jax.random.normal(kb2, (C,), dtype=jnp.float32) * 0.1

    out = multi_head_self_attention(x, wqkv, bqkv, wproj, bproj, num_heads)
    out = jax.block_until_ready(out)

    ref = mhsa_reference(x, wqkv, bqkv, wproj, bproj, num_heads)
    assert out.shape == (B, N, C)
    # bf16 matmul operands + approx EUP reciprocal -> compare at bf16-level tolerance.
    assert jnp.allclose(out, ref, atol=2e-2, rtol=2e-2), "mismatch vs f32 reference"

    print("KERNEL_OK")
</pallas_src>

<mosaic_0001>
module attributes {stable_mosaic.version = 11 : i64} {
  func.func @mhsa_kernel(%arg0: i32, %arg1: memref<1x8x32xf32, #tpu.memory_space<vmem>>, %arg2: memref<32x96xbf16, #tpu.memory_space<vmem>>, %arg3: memref<1x96xf32, #tpu.memory_space<vmem>>, %arg4: memref<4x8x32xbf16, #tpu.memory_space<vmem>>, %arg5: memref<1x32xf32, #tpu.memory_space<vmem>>, %arg6: memref<1x8x32xf32, #tpu.memory_space<vmem>>) attributes {dimension_semantics = [#tpu.dimension_semantics<parallel>], iteration_bounds = array<i64: 2>, scalar_prefetch = 0 : i64, scratch_operands = 0 : i64, tpu.core_type = #tpu.core_type<tc>, window_params = [{transform_indices = @transform_0, window_bounds = array<i64: 1, 8, 32>}, {pipeline_mode = #tpu.pipeline_mode<synchronous>, transform_indices = @transform_1, window_bounds = array<i64: 32, 96>}, {pipeline_mode = #tpu.pipeline_mode<synchronous>, transform_indices = @transform_2, window_bounds = array<i64: 1, 96>}, {pipeline_mode = #tpu.pipeline_mode<synchronous>, transform_indices = @transform_3, window_bounds = array<i64: 4, 8, 32>}, {pipeline_mode = #tpu.pipeline_mode<synchronous>, transform_indices = @transform_4, window_bounds = array<i64: 1, 32>}, {transform_indices = @transform_5, window_bounds = array<i64: 1, 8, 32>}]} {
    %c0 = arith.constant 0 : index
    %c0_0 = arith.constant 0 : index
    %c0_1 = arith.constant 0 : index
    %0 = vector.load %arg1[%c0, %c0_0, %c0_1] : memref<1x8x32xf32, #tpu.memory_space<vmem>>, vector<1x8x32xf32>
    %1 = vector.shape_cast %0 : vector<1x8x32xf32> to vector<8x32xf32>
    %2 = arith.truncf %1 : vector<8x32xf32> to vector<8x32xbf16>
    %c0_2 = arith.constant 0 : index
    %c0_3 = arith.constant 0 : index
    %3 = vector.load %arg2[%c0_2, %c0_3] : memref<32x96xbf16, #tpu.memory_space<vmem>>, vector<32x96xbf16>
    %cst = arith.constant dense<0.000000e+00> : vector<8x96xf32>
    %4 = tpu.matmul %2, %3, %cst {dimension_numbers = #tpu.dot_dimension_numbers<[1], [0], [0], [1], [0, 0, 1, 1], [], []>} : vector<8x32xbf16>, vector<32x96xbf16>, vector<8x96xf32> -> vector<8x96xf32>
    %c0_4 = arith.constant 0 : index
    %c0_5 = arith.constant 0 : index
    %5 = vector.load %arg3[%c0_4, %c0_5] : memref<1x96xf32, #tpu.memory_space<vmem>>, vector<1x96xf32>
    %6 = vector.broadcast %5 : vector<1x96xf32> to vector<8x96xf32>
    %7 = arith.addf %4, %6 : vector<8x96xf32>
    %8 = vector.extract_strided_slice %7 {offsets = [0, 0], sizes = [8, 8], strides = [1, 1]} : vector<8x96xf32> to vector<8x8xf32>
    %9 = vector.extract_strided_slice %7 {offsets = [0, 8], sizes = [8, 8], strides = [1, 1]} : vector<8x96xf32> to vector<8x8xf32>
    %10 = vector.extract_strided_slice %7 {offsets = [0, 16], sizes = [8, 8], strides = [1, 1]} : vector<8x96xf32> to vector<8x8xf32>
    %11 = vector.extract_strided_slice %7 {offsets = [0, 24], sizes = [8, 8], strides = [1, 1]} : vector<8x96xf32> to vector<8x8xf32>
    %12 = vector.shape_cast %8 : vector<8x8xf32> to vector<1x8x8xf32>
    %13 = vector.shape_cast %9 : vector<8x8xf32> to vector<1x8x8xf32>
    %14 = vector.shape_cast %10 : vector<8x8xf32> to vector<1x8x8xf32>
    %15 = vector.shape_cast %11 : vector<8x8xf32> to vector<1x8x8xf32>
    %16 = tpu.concatenate %12, %13, %14, %15 in 0 : vector<1x8x8xf32>, vector<1x8x8xf32>, vector<1x8x8xf32>, vector<1x8x8xf32> -> vector<4x8x8xf32>
    %cst_6 = arith.constant 0.353553385 : f32
    %17 = vector.broadcast %cst_6 : f32 to vector<4x8x8xf32>
    %18 = arith.mulf %16, %17 : vector<4x8x8xf32>
    %19 = vector.extract_strided_slice %7 {offsets = [0, 32], sizes = [8, 8], strides = [1, 1]} : vector<8x96xf32> to vector<8x8xf32>
    %20 = vector.extract_strided_slice %7 {offsets = [0, 40], sizes = [8, 8], strides = [1, 1]} : vector<8x96xf32> to vector<8x8xf32>
    %21 = vector.extract_strided_slice %7 {offsets = [0, 48], sizes = [8, 8], strides = [1, 1]} : vector<8x96xf32> to vector<8x8xf32>
    %22 = vector.extract_strided_slice %7 {offsets = [0, 56], sizes = [8, 8], strides = [1, 1]} : vector<8x96xf32> to vector<8x8xf32>
    %23 = vector.shape_cast %19 : vector<8x8xf32> to vector<1x8x8xf32>
    %24 = vector.shape_cast %20 : vector<8x8xf32> to vector<1x8x8xf32>
    %25 = vector.shape_cast %21 : vector<8x8xf32> to vector<1x8x8xf32>
    %26 = vector.shape_cast %22 : vector<8x8xf32> to vector<1x8x8xf32>
    %27 = tpu.concatenate %23, %24, %25, %26 in 0 : vector<1x8x8xf32>, vector<1x8x8xf32>, vector<1x8x8xf32>, vector<1x8x8xf32> -> vector<4x8x8xf32>
    %28 = vector.extract_strided_slice %7 {offsets = [0, 64], sizes = [8, 8], strides = [1, 1]} : vector<8x96xf32> to vector<8x8xf32>
    %29 = vector.extract_strided_slice %7 {offsets = [0, 72], sizes = [8, 8], strides = [1, 1]} : vector<8x96xf32> to vector<8x8xf32>
    %30 = vector.extract_strided_slice %7 {offsets = [0, 80], sizes = [8, 8], strides = [1, 1]} : vector<8x96xf32> to vector<8x8xf32>
    %31 = vector.extract_strided_slice %7 {offsets = [0, 88], sizes = [8, 8], strides = [1, 1]} : vector<8x96xf32> to vector<8x8xf32>
    %32 = vector.shape_cast %28 : vector<8x8xf32> to vector<1x8x8xf32>
    %33 = vector.shape_cast %29 : vector<8x8xf32> to vector<1x8x8xf32>
    %34 = vector.shape_cast %30 : vector<8x8xf32> to vector<1x8x8xf32>
    %35 = vector.shape_cast %31 : vector<8x8xf32> to vector<1x8x8xf32>
    %36 = tpu.concatenate %32, %33, %34, %35 in 0 : vector<1x8x8xf32>, vector<1x8x8xf32>, vector<1x8x8xf32>, vector<1x8x8xf32> -> vector<4x8x8xf32>
    %37 = arith.truncf %18 : vector<4x8x8xf32> to vector<4x8x8xbf16>
    %38 = arith.truncf %27 : vector<4x8x8xf32> to vector<4x8x8xbf16>
    "tpu.trace_start"() <{level = 10 : i32, message = "hnd,hmd->hnm"}> : () -> ()
    %cst_7 = arith.constant dense<0.000000e+00> : vector<4x8x8xf32>
    %39 = tpu.matmul %37, %38, %cst_7 {dimension_numbers = #tpu.dot_dimension_numbers<[2], [2], [1], [1], [0, 0, 0, 1, 1, 1], [0], [0]>} : vector<4x8x8xbf16>, vector<4x8x8xbf16>, vector<4x8x8xf32> -> vector<4x8x8xf32>
    "tpu.trace_stop"() : () -> ()
    %cst_8 = arith.constant dense<0xFF800000> : vector<4x8xf32>
    %40 = vector.multi_reduction <maximumf>, %39, %cst_8 [2] : vector<4x8x8xf32> to vector<4x8xf32>
    %41 = vector.shape_cast %40 : vector<4x8xf32> to vector<4x8x1xf32>
    %42 = vector.broadcast %41 : vector<4x8x1xf32> to vector<4x8x8xf32>
    %43 = arith.subf %39, %42 : vector<4x8x8xf32>
    %44 = math.exp %43 : vector<4x8x8xf32>
    %cst_9 = arith.constant dense<0.000000e+00> : vector<4x8xf32>
    %45 = vector.multi_reduction <add>, %44, %cst_9 [2] : vector<4x8x8xf32> to vector<4x8xf32>
    %46 = vector.shape_cast %45 : vector<4x8xf32> to vector<4x8x1xf32>
    %47 = tpu.reciprocal %46 {approx = true} : vector<4x8x1xf32> -> vector<4x8x1xf32>
    %48 = vector.broadcast %47 : vector<4x8x1xf32> to vector<4x8x8xf32>
    %49 = arith.mulf %44, %48 : vector<4x8x8xf32>
    %50 = arith.truncf %49 : vector<4x8x8xf32> to vector<4x8x8xbf16>
    %51 = arith.truncf %36 : vector<4x8x8xf32> to vector<4x8x8xbf16>
    "tpu.trace_start"() <{level = 10 : i32, message = "hnm,hmd->hnd"}> : () -> ()
    %cst_10 = arith.constant dense<0.000000e+00> : vector<4x8x8xf32>
    %52 = tpu.matmul %50, %51, %cst_10 {dimension_numbers = #tpu.dot_dimension_numbers<[2], [1], [1], [2], [0, 0, 0, 1, 1, 2], [0], [0]>} : vector<4x8x8xbf16>, vector<4x8x8xbf16>, vector<4x8x8xf32> -> vector<4x8x8xf32>
    %cst_11 = arith.constant 0.000000e+00 : f32
    "tpu.trace_stop"() : () -> ()
    %53 = vector.broadcast %cst_11 : f32 to vector<8x32xf32>
    %54 = vector.extract_strided_slice %52 {offsets = [0, 0, 0], sizes = [1, 8, 8], strides = [1, 1, 1]} : vector<4x8x8xf32> to vector<1x8x8xf32>
    %55 = vector.shape_cast %54 : vector<1x8x8xf32> to vector<8x8xf32>
    %56 = arith.truncf %55 : vector<8x8xf32> to vector<8x8xbf16>
    %c0_12 = arith.constant 0 : index
    %c0_13 = arith.constant 0 : index
    %c0_14 = arith.constant 0 : index
    %57 = vector.load %arg4[%c0_12, %c0_13, %c0_14] : memref<4x8x32xbf16, #tpu.memory_space<vmem>>, vector<1x8x32xbf16>
    %58 = vector.shape_cast %57 : vector<1x8x32xbf16> to vector<8x32xbf16>
    %cst_15 = arith.constant dense<0.000000e+00> : vector<8x32xf32>
    %59 = tpu.matmul %56, %58, %cst_15 {dimension_numbers = #tpu.dot_dimension_numbers<[1], [0], [0], [1], [0, 0, 1, 1], [], []>} : vector<8x8xbf16>, vector<8x32xbf16>, vector<8x32xf32> -> vector<8x32xf32>
    %60 = arith.addf %53, %59 : vector<8x32xf32>
    %61 = vector.extract_strided_slice %52 {offsets = [1, 0, 0], sizes = [1, 8, 8], strides = [1, 1, 1]} : vector<4x8x8xf32> to vector<1x8x8xf32>
    %62 = vector.shape_cast %61 : vector<1x8x8xf32> to vector<8x8xf32>
    %63 = arith.truncf %62 : vector<8x8xf32> to vector<8x8xbf16>
    %c1 = arith.constant 1 : index
    %c0_16 = arith.constant 0 : index
    %c0_17 = arith.constant 0 : index
    %64 = vector.load %arg4[%c1, %c0_16, %c0_17] : memref<4x8x32xbf16, #tpu.memory_space<vmem>>, vector<1x8x32xbf16>
    %65 = vector.shape_cast %64 : vector<1x8x32xbf16> to vector<8x32xbf16>
    %cst_18 = arith.constant dense<0.000000e+00> : vector<8x32xf32>
    %66 = tpu.matmul %63, %65, %cst_18 {dimension_numbers = #tpu.dot_dimension_numbers<[1], [0], [0], [1], [0, 0, 1, 1], [], []>} : vector<8x8xbf16>, vector<8x32xbf16>, vector<8x32xf32> -> vector<8x32xf32>
    %67 = arith.addf %60, %66 : vector<8x32xf32>
    %68 = vector.extract_strided_slice %52 {offsets = [2, 0, 0], sizes = [1, 8, 8], strides = [1, 1, 1]} : vector<4x8x8xf32> to vector<1x8x8xf32>
    %69 = vector.shape_cast %68 : vector<1x8x8xf32> to vector<8x8xf32>
    %70 = arith.truncf %69 : vector<8x8xf32> to vector<8x8xbf16>
    %c2 = arith.constant 2 : index
    %c0_19 = arith.constant 0 : index
    %c0_20 = arith.constant 0 : index
    %71 = vector.load %arg4[%c2, %c0_19, %c0_20] : memref<4x8x32xbf16, #tpu.memory_space<vmem>>, vector<1x8x32xbf16>
    %72 = vector.shape_cast %71 : vector<1x8x32xbf16> to vector<8x32xbf16>
    %cst_21 = arith.constant dense<0.000000e+00> : vector<8x32xf32>
    %73 = tpu.matmul %70, %72, %cst_21 {dimension_numbers = #tpu.dot_dimension_numbers<[1], [0], [0], [1], [0, 0, 1, 1], [], []>} : vector<8x8xbf16>, vector<8x32xbf16>, vector<8x32xf32> -> vector<8x32xf32>
    %74 = arith.addf %67, %73 : vector<8x32xf32>
    %75 = vector.extract_strided_slice %52 {offsets = [3, 0, 0], sizes = [1, 8, 8], strides = [1, 1, 1]} : vector<4x8x8xf32> to vector<1x8x8xf32>
    %76 = vector.shape_cast %75 : vector<1x8x8xf32> to vector<8x8xf32>
    %77 = arith.truncf %76 : vector<8x8xf32> to vector<8x8xbf16>
    %c3 = arith.constant 3 : index
    %c0_22 = arith.constant 0 : index
    %c0_23 = arith.constant 0 : index
    %78 = vector.load %arg4[%c3, %c0_22, %c0_23] : memref<4x8x32xbf16, #tpu.memory_space<vmem>>, vector<1x8x32xbf16>
    %79 = vector.shape_cast %78 : vector<1x8x32xbf16> to vector<8x32xbf16>
    %cst_24 = arith.constant dense<0.000000e+00> : vector<8x32xf32>
    %80 = tpu.matmul %77, %79, %cst_24 {dimension_numbers = #tpu.dot_dimension_numbers<[1], [0], [0], [1], [0, 0, 1, 1], [], []>} : vector<8x8xbf16>, vector<8x32xbf16>, vector<8x32xf32> -> vector<8x32xf32>
    %81 = arith.addf %74, %80 : vector<8x32xf32>
    %c0_25 = arith.constant 0 : index
    %c0_26 = arith.constant 0 : index
    %82 = vector.load %arg5[%c0_25, %c0_26] : memref<1x32xf32, #tpu.memory_space<vmem>>, vector<1x32xf32>
    %83 = vector.broadcast %82 : vector<1x32xf32> to vector<8x32xf32>
    %84 = arith.addf %81, %83 : vector<8x32xf32>
    %c0_27 = arith.constant 0 : index
    %c0_28 = arith.constant 0 : index
    %c0_29 = arith.constant 0 : index
    %85 = vector.load %arg6[%c0_27, %c0_28, %c0_29] : memref<1x8x32xf32, #tpu.memory_space<vmem>>, vector<1x8x32xf32>
    %86 = vector.shape_cast %85 : vector<1x8x32xf32> to vector<8x32xf32>
    %87 = vector.shape_cast %84 : vector<8x32xf32> to vector<1x8x32xf32>
    tpu.vector_store %arg6[%c0_27, %c0_28, %c0_29], %87 {strides = array<i32>} : memref<1x8x32xf32, #tpu.memory_space<vmem>>, vector<1x8x32xf32>,
    return
  }
  func.func @transform_0(%arg0: i32) -> (i32, i32, i32) {
    %c0_i32 = arith.constant 0 : i32
    %c0_i32_0 = arith.constant 0 : i32
    %c0_i32_1 = arith.constant 0 : i32
    return %arg0, %c0_i32, %c0_i32_0 : i32, i32, i32
  }
  func.func @transform_1(%arg0: i32) -> (i32, i32) {
    %c0_i32 = arith.constant 0 : i32
    %c0_i32_0 = arith.constant 0 : i32
    %c0_i32_1 = arith.constant 0 : i32
    return %c0_i32, %c0_i32_0 : i32, i32
  }
  func.func @transform_2(%arg0: i32) -> (i32, i32) {
    %c0_i32 = arith.constant 0 : i32
    %c0_i32_0 = arith.constant 0 : i32
    %c0_i32_1 = arith.constant 0 : i32
    return %c0_i32, %c0_i32_0 : i32, i32
  }
  func.func @transform_3(%arg0: i32) -> (i32, i32, i32) {
    %c0_i32 = arith.constant 0 : i32
    %c0_i32_0 = arith.constant 0 : i32
    %c0_i32_1 = arith.constant 0 : i32
    %c0_i32_2 = arith.constant 0 : i32
    return %c0_i32, %c0_i32_0, %c0_i32_1 : i32, i32, i32
  }
  func.func @transform_4(%arg0: i32) -> (i32, i32) {
    %c0_i32 = arith.constant 0 : i32
    %c0_i32_0 = arith.constant 0 : i32
    %c0_i32_1 = arith.constant 0 : i32
    return %c0_i32, %c0_i32_0 : i32, i32
  }
  func.func @transform_5(%arg0: i32) -> (i32, i32, i32) {
    %c0_i32 = arith.constant 0 : i32
    %c0_i32_0 = arith.constant 0 : i32
    %c0_i32_1 = arith.constant 0 : i32
    return %arg0, %c0_i32, %c0_i32_0 : i32, i32, i32
  }
}

</mosaic_0001>

<bundles_post_ra>
// kernel: tpu_custom_call.1
= control target key start
LH: loop header
LB: loop body
LE: loop exit
PB: predicated region body
PF: predicated region fallthrough
CT: control target
= control target key end

     0   :  { %10 = vsyncpa [#allocation3], 0  ;;  %s1304_s0 = inlined_call_operand.hbm [shape: f32[2,8,32], index: 0, kind: input, shape index: {}]   ;;  %s1305_s1 = inlined_call_operand.hbm [shape: bf16[32,96], index: 1, kind: input, shape index: {}]   ;;  %s1306_s2 = inlined_call_operand.vmem [shape: f32[1,96], index: 2, kind: input, shape index: {}]   ;;  %s1307_s3 = inlined_call_operand.hbm [shape: bf16[4,8,32], index: 3, kind: input, shape index: {}]   ;;  %s1308_s4 = inlined_call_operand.vmem [shape: f32[1,32], index: 4, kind: input, shape index: {}]   ;;  %s1309_s5 = inlined_call_operand.hbm [shape: f32[2,8,32], index: 5, kind: output, shape index: {}]  }
   0x1   :  { %12 = vsyncpa [#allocation3 + $0x1], 0 }
   0x2   :  { %13 = vsyncpa [#allocation6], 0 }
   0x3   :  { %14 = vsyncpa [#allocation4], 0 }
   0x4   :  { %16 = vsyncpa [#allocation4 + $0x1], 0  ;;  %s1099_s18 = smov 0   ;;  %s1101_s19 = smov 0  }
   0x5   :  { %s1103_s20 = smov 0   ;;  %s1105_s21 = smov 0  }
   0x6 LB: > { %s174_s24 = sshll.u32 %s1305_s1, 4  ;;  %s1123_s25 = sadd.s32 4294967295, %s1058_s21   ;;  %s1058_s21 = sphi %s1105_s21, %s1320_s21   ;;  %s1054_s20 = sphi %s1103_s20, %s1319_s20   ;;  %s1050_s19 = sphi %s1101_s19, %s1318_s19   ;;  %s1046_s18 = sphi %s1099_s18, %s1317_s18   ;;  %s175_s24 = int_to_ptr.hbm [resolvable:$true] %s174_s24 }
   0x7   : > { %p768_p0 = scmp.ge.s32.totalorder %s1058_s21, 1  ;;  %p43_p1 = scmp.eq.s32.totalorder %s1123_s25, 0 }
   0x8   : > { %p163_p2 = scmp.lt.s32.totalorder %s1058_s21, 3  ;;  %s1060_s27 = smov [#allocation5]  }
   0x9   : > { %s176_s28 = sshll.u32 %s1060_s27, 4  ;;  %s191_s6 = sshll.u32 %s1307_s3, 4  ;;  %s177_s28 = int_to_ptr.vmem [resolvable:$true] %s176_s28  ;;  %s192_s6 = int_to_ptr.hbm [resolvable:$true] %s191_s6 }
   0xa   : > { %p1128_p3 = pnand %p768_p0, %p163_p2  ;;  %s1061_s7 = smov [#allocation7]  }
   0xb   : > { %s193_s8 = sshll.u32 %s1061_s7, 4  ;;  %s1062_s9 = smov 64   ;;  %s194_s8 = int_to_ptr.vmem [resolvable:$true] %s193_s8 }
   0xc   : > { %p818_p4 = pneg %p1128_p3  ;;  %s1063_s10 = smov 4  }
   0xd   : > { %s767_s11 = sadd.s32 4294967294, %s1058_s21   ;;  %s1142_s12 = sadd.s32 1, %s1058_s21  }
   0xe   : > { %p819_p6 = pnand %p818_p4, %p43_p1  ;;  %s26_s13 = ssub.s32 %s1058_s21, %s1142_s12 }
   0xf   : > { %s29_s14 = sadd.s32 1, %s1054_s20  ;;  %p27_p7 = scmp.eq.s32.totalorder %s26_s13, 0 }
  0x10   : > { %821 = dma.hbm_to_vmem [thread:$0]  (!%p819_p6), %s175_s24, 256, %s177_s28, [#allocation6], %s1062_s9, %s1062_s9, %s1063_s10  }
  0x11   : > { %824 = dma.hbm_to_vmem [thread:$0]  (!%p819_p6), %s192_s6, 256, %s194_s8, [#allocation6], %s1062_s9, %s1062_s9, %s1063_s10  }
  0x12   : > { %p36_p8 = scmp.ne.s32.totalorder %s1054_s20, %s1050_s19  ;;  %p37_p9 = scmp.eq.s32.totalorder %s1058_s21, 0 }
  0x13   : > { %p42_p10 = scmp.ne.s32.totalorder %s1050_s19, %s1046_s18  ;;  %p150_p13 = scmp.eq.s32.totalorder %s1123_s25, 1 }
  0x14   : > { %s1153_s15 = scalar_select %p27_p7, %s1054_s20, %s29_s14  }
  0x15   : > { %p1155_p11 = por %p37_p9, %p36_p8  ;;  %p1161_p12 = por %p43_p1, %p42_p10 }
  0x16   : > { %p156_p0 = scmp.eq.s32.totalorder %s767_s11, 1  ;;  %p835_p2 = scmp.lt.s32.totalorder %s1058_s21, 2 }
  0x17   : > { %s210_s22 = sand.u32 1, %s1054_s20   ;;  %p1168_p4 = por %p150_p13, %p36_p8 }
  0x18   : > { %p1172_p6 = por %p156_p0, %p42_p10  ;;  %s772_s27 = sshll.u32 %s210_s22, 3 }
  0x19   : > { %s773_s28 = sshll.u32 %s1058_s21, 3  ;;  %s214_s7 = scalar_lea.vmem [#allocation2], %s772_s27 }
  0x1a   : > { %s218_s6 = scalar_lea.hbm %s1304_s0, %s773_s28  ;;  %s222_s8 = sshll.u32 %s214_s7, 4  ;;  %s223_s8 = int_to_ptr.vmem [resolvable:$true] %s222_s8 }
  0x1b   : > { %s220_s9 = sshll.u32 %s218_s6, 4  ;;  %p1182_p7 = pnand %p835_p2, %p1155_p11  ;;  %s221_s9 = int_to_ptr.hbm [resolvable:$true] %s220_s9 }
  0x1c   : > { %s211_s11 = scalar_lea.sflag [#allocation3], %s210_s22  ;;  %s958_s13 = sshra.s32 %s221_s9, 4  ;;  %s959_s13 = int_to_ptr.hbm [resolvable:$true] %s958_s13 }
  0x1d   : > { %s960_s14 = scalar_lea.hbm %s959_s13, 8  ;;  %p962_p9 = pneg %p1182_p7 }
  0x1e   : > { %p961_p8 = scmp.ne.s32.totalorder %s959_s13, %s960_s14  ;;  %s965_s29 = scalar_lea.hbm %s1304_s0, 16 }
  0x1f   : > { %p966_p11 = scmp.lt.s32.totalorder %s959_s13, %s1304_s0  ;;  %p967_p0 = scmp.lt.s32.totalorder %s965_s29, %s960_s14 }
  0x20   : > { %p963_p10 = pnand %p962_p9, %p961_p8 }
  0x21   : > { %p968_p2 = por %p967_p0, %p966_p11 }
  0x22   : > { %p964_p13 = pneg %p963_p10 }
  0x24   : > { %p969_p5 = pnand %p968_p2, %p964_p13 }
  0x26   : > { %972 = shalt.err (!%p969_p5)
}
  0x27   : > { %828 = dma.hbm_to_vmem [thread:$0]  (!%p1182_p7), %s221_s9, 128, %s223_s8, %s211_s11  }
  0x28   : > { %231 = sbr.rel (%p1128_p3) target bundleno = 1095 (0x447), region = 40  ;;  %s1199_s22 = sand.u32 (!%p1128_p3), 1, %s1050_s19  }
  0x29   : > { %s775_s6 = sshll.u32 (!%p1128_p3), %s1199_s22, 3  ;;  %s234_s7 = scalar_lea.sflag (!%p1128_p3), [#allocation3], %s1199_s22 }
  0x2a   : > { %s237_s13 = scalar_lea.vmem (!%p1128_p3), [#allocation2], %s775_s6 }
  0x2d   : > { %1033 = dma.done.wait (%p1161_p12), %s234_s7, 128  }
  0x2e   : > { %1035 = vsyncadd (%p1161_p12), %s234_s7, 4294967168 }
  0x2f   : > { %1037 = dma.done.wait (%p43_p1), [#allocation6], 512  }
  0x30   : > { %1039 = vsyncadd (%p43_p1), [#allocation6], 4294966784  ;;  %v805_v0 = vld [vmem:[#allocation5 + $0x8] sm:$0xff]  ;;  %v804_v1 = vld [vmem:[#allocation5] sm:$0xff]  ;;  %vm298_vm0 = vcmask 261120   ;;  %s1064_s17 = smov 104  }
  0x31   : > { %308 = vmatpush.bf16.msra.mxu0 %v805_v0  ;;  %v276_v2 = vld [vmem:[%s237_s13] sm:$0xff]  ;;  %s1065_s9 = smov 112   ;;  %s1066_s10 = smov 120   ;;  %vm342_vm1 = vcmask 64512   ;;  %vm487_vm2 = vcmask 1043456  }
  0x32   : > { %v277_v3 = vpack.c.bf16 %v276_v2, %v276_v2  ;;  %v880_v4 = vld [vmem:[%s1306_s2] ss:$0 sm:$0xff]  ;;  %s1067_s11 = smov 96   ;;  %s1068_s14 = smov 64  }
  0x33   : > { %s801_s27 = sshll.u32 %s1123_s25, 3  ;;  %s274_s13 = scalar_lea.vmem [#allocation8], %s775_s6 }
  0x34   : > { %s673_s30 = scalar_lea.hbm %s1309_s5, %s801_s27  ;;  %s675_s26 = sshll.u32 %s274_s13, 4  ;;  %s676_s26 = int_to_ptr.vmem [resolvable:$true] %s675_s26 }
  0x35   : > { %309 = vmatpush.bf16.msra.mxu0 %v804_v1  ;;  %s677_s8 = sshll.u32 %s673_s30, 4  ;;  %s663_s25 = scalar_lea.sflag [#allocation4], %s1199_s22  ;;  %s678_s8 = int_to_ptr.hbm [resolvable:$true] %s677_s8 }
  0x36   : > { %s1008_s6 = scalar_lea.hbm %s1309_s5, 16 }
  0x38   : > { %787 = vmatmul.msk.bf16.vlgmr.msra.gmra.mxu0 %vm298_vm0, %v277_v3 }
  0xb5   : > { %v311_v5 = vpop.f32.mrf.mxu0 }
  0xb6   : > { %v312_v6 = vadd.f32 %v880_v4, %v311_v5 }
  0xb8   : > { %322 = vrot.lane.b32.xlu1 %v312_v6, %s1064_s17  ;;  %319 = vrot.lane.b32.xlu0 %v312_v6, %s1065_s9  ;;  %v333_v20 = vpack.c.bf16 %v312_v6, %v312_v6  ;;  %v325_v29 = vmul.f32 0.35355338, %v312_v6  ;;  %s1002_s17 = sshra.s32 %s678_s8, 4  ;;  %s1003_s17 = int_to_ptr.hbm [resolvable:$true] %s1002_s17 }
  0xb9   : > { %s1004_s9 = scalar_lea.hbm %s1003_s17, 8  ;;  %p1009_p12 = scmp.lt.s32.totalorder %s1003_s17, %s1309_s5 }
  0xba   : > { %v338_v21 = vunpack.c.l.b16 %v333_v20  ;;  %v329_v30 = vpack.c.bf16 %v325_v29, %v325_v29  ;;  %p1005_p1 = scmp.ne.s32.totalorder %s1003_s17, %s1004_s9  ;;  %p1010_p7 = scmp.lt.s32.totalorder %s1008_s6, %s1004_s9 }
  0xbc   : > { %v1223_v22 = vpack.c.b16 %v338_v21, %v338_v21  ;;  %p1006_p3 = pnand %p1005_p1, %p1168_p4  ;;  %p1011_p8 = por %p1010_p7, %p1009_p12 }
  0xbd   : > { %v313_v7 = vpop.f32.mrf.mxu0 }
  0xbe   : > { %p1007_p5 = pneg %p1006_p3 }
  0xc0   : > { %316 = vrot.lane.b32.xlu0 %v312_v6, %s1066_s10  ;;  %p1012_p9 = pnand %p1011_p8, %p1007_p5 }
 0x12a   : > { %v323_v8 = vpop.permute.xlu1 %322  ;;  %v320_v9 = vpop.permute.xlu0 %319 }
 0x12b   : > { %v336_v10 = vpack.c.bf16 %v323_v8, %v323_v8  ;;  %v335_v11 = vpack.c.bf16 %v320_v9, %v320_v9  ;;  %v328_v35 = vmul.f32 0.35355338, %v323_v8  ;;  %v327_v36 = vmul.f32 0.35355338, %v320_v9 }
 0x12d   : > { %v411_v12 = vunpack.c.l.b16 %v336_v10  ;;  %v387_v13 = vunpack.c.l.b16 %v335_v11  ;;  %v332_v37 = vpack.c.bf16 %v328_v35, %v328_v35  ;;  %v331_v38 = vpack.c.bf16 %v327_v36, %v327_v36  ;;  %v612_v35 = vld [vmem:[#allocation7 + $0x8] sm:$0xf] }
 0x12e   : > { %v617_v36 = vsel %vm487_vm2, %v612_v35, 0 }
 0x12f   : > { %v1217_v14 = vpack.c.b16 %v411_v12, %v411_v12  ;;  %v388_v15 = vpack.c.b16 %v387_v13, %v387_v13 }
 0x131   : > { %413 = vrot.lane.b32.xlu0 %v1217_v14, %s1067_s11  ;;  %389 = vrot.lane.b32.xlu1 %v388_v15, %s1067_s11 }
 0x132   : > { %v317_v16 = vpop.permute.xlu0 %316 }
 0x133   : > { %v334_v17 = vpack.c.bf16 %v317_v16, %v317_v16  ;;  %v326_v25 = vmul.f32 0.35355338, %v317_v16 }
 0x135   : > { %v363_v18 = vunpack.c.l.b16 %v334_v17  ;;  %v330_v26 = vpack.c.bf16 %v326_v25, %v326_v25 }
 0x137   : > { %v1220_v19 = vpack.c.b16 %v363_v18, %v363_v18 }
 0x139   : > { %365 = vrot.lane.b32.xlu2 %v1220_v19, %s1067_s11 }
 0x141   : > { %340 = vrot.lane.b32.xlu2 %v1223_v22, %s1067_s11 }
 0x193   : > { %v366_v23 = vpop.permute.xlu2 %365 }
 0x194   : > { %v371_v24 = vsel %vm342_vm1, %v366_v23, 0 }
 0x195   : > { %380 = vmatpush.bf16.xpose.msra.mxu2 %v371_v24 }
 0x19b   : > { %v341_v27 = vpop.permute.xlu2 %340 }
 0x19c   : > { %789 = vmatmul.msk.bf16.vlgmr.msra.gmra.mxu2 %vm342_vm1, %v330_v26  ;;  %v347_v28 = vsel %vm342_vm1, %v341_v27, 0 }
 0x19d   : > { %356 = vmatpush.bf16.xpose.msra.mxu1 %v347_v28 }
 0x1a3   : > { %v390_v31 = vpop.permute.xlu1 %389  ;;  %v414_v32 = vpop.permute.xlu0 %413 }
 0x1a4   : > { %788 = vmatmul.msk.bf16.vlgmr.msra.gmra.mxu1 %vm342_vm1, %v329_v30  ;;  %v395_v33 = vsel %vm342_vm1, %v390_v31, 0  ;;  %v419_v34 = vsel %vm342_vm1, %v414_v32, 0  ;;  %v568_v31 = vld [vmem:[#allocation7] sm:$0xf] }
 0x1a5   : > { %404 = vmatpush.bf16.xpose.msra.mxu3 %v395_v33  ;;  %428 = vmatpush.bf16.xpose.msrb.mxu0 %v419_v34  ;;  %v595_v32 = vsel %vm487_vm2, %v568_v31, 0  ;;  %v571_v33 = vld [vmem:[#allocation7 + $0x4] sm:$0xf] }
 0x1a6   : > { %v576_v34 = vsel %vm487_vm2, %v571_v33, 0 }
 0x1ac   : > { %790 = vmatmul.msk.bf16.vlgmr.msra.gmra.mxu3 %vm342_vm1, %v331_v38  ;;  %791 = vmatmul.msk.bf16.vlgmr.msrb.gmra.mxu0 %vm342_vm1, %v332_v37  ;;  %v635_v37 = vld [vmem:[#allocation7 + $0xc] sm:$0xf] }
 0x1ad   : > { %v640_v38 = vsel %vm487_vm2, %v635_v37, 0 }
 0x21f   : > { %v382_v39 = vpop.f32.mrf.mxu2 }
 0x220   : > { %v437_v40 = vsel %vm342_vm1, %v382_v39, -inf }
 0x221   : > { %438 = vmax.xlane.f32.xlu0 %v437_v40  ;;  %v358_v41 = vpop.f32.mrf.mxu1 }
 0x222   : > { %v434_v42 = vsel %vm342_vm1, %v358_v41, -inf }
 0x223   : > { %435 = vmax.xlane.f32.xlu2 %v434_v42 }
 0x227   : > { %v384_v43 = vpop.f32.mrf.mxu2 }
 0x229   : > { %v360_v44 = vpop.f32.mrf.mxu1  ;;  %v430_v45 = vpop.f32.mrf.mxu0 }
 0x22a   : > { %v443_v46 = vsel %vm342_vm1, %v430_v45, -inf }
 0x22b   : > { %444 = vmax.xlane.f32.xlu2 %v443_v46 }
 0x22f   : > { %v406_v47 = vpop.f32.mrf.mxu3 }
 0x230   : > { %v440_v48 = vsel %vm342_vm1, %v406_v47, -inf }
 0x231   : > { %441 = vmax.xlane.f32.xlu1 %v440_v48  ;;  %v432_v49 = vpop.f32.mrf.mxu0 }
 0x237   : > { %v408_v50 = vpop.f32.mrf.mxu3 }
 0x24a   : > { %525 = vrot.lane.b32.xlu1 %v388_v15, %s1068_s14 }
 0x294   : > { %v439_v51 = vpop.xlane.xlu0 %438 }
 0x295   : > { %v447_v52 = vsub.f32 %v382_v39, %v439_v51 }
 0x296   : > { %v436_v53 = vpop.xlane.xlu2 %435 }
 0x297   : > { %v452_v54 = vmul.f32 1.442695, %v447_v52  ;;  %v446_v55 = vsub.f32 %v358_v41, %v436_v53 }
 0x299   : > { %882 = vpow2.f32 %v452_v54  ;;  %v450_v56 = vmul.f32 1.442695, %v446_v55 }
 0x29b   : > { %884 = vpow2.f32 %v450_v56 }
 0x29e   : > { %v445_v57 = vpop.xlane.xlu2 %444 }
 0x29f   : > { %v883_v58 = vpop.eup %882  ;;  %v449_v59 = vsub.f32 %v430_v45, %v445_v57 }
 0x2a0   : > { %v461_v60 = vsel %vm342_vm1, %v883_v58, 0.0 }
 0x2a1   : > { %v885_v61 = vpop.eup %884  ;;  %v456_v62 = vmul.f32 1.442695, %v449_v59  ;;  %462 = vadd.xlane.f32.xlu0 %v461_v60 }
 0x2a2   : > { %v458_v63 = vsel %vm342_vm1, %v885_v61, 0.0 }
 0x2a3   : > { %886 = vpow2.f32 %v456_v62  ;;  %459 = vadd.xlane.f32.xlu2 %v458_v63 }
 0x2a4   : > { %v442_v0 = vpop.xlane.xlu1 %441 }
 0x2a5   : > { %v448_v1 = vsub.f32 %v406_v47, %v442_v0 }
 0x2a7   : > { %v454_v2 = vmul.f32 1.442695, %v448_v1 }
 0x2a9   : > { %v887_v3 = vpop.eup %886  ;;  %888 = vpow2.f32 %v454_v2 }
 0x2aa   : > { %v467_v4 = vsel %vm342_vm1, %v887_v3, 0.0 }
 0x2ab   : > { %468 = vadd.xlane.f32.xlu2 %v467_v4 }
 0x2af   : > { %v889_v5 = vpop.eup %888 }
 0x2b0   : > { %v464_v6 = vsel %vm342_vm1, %v889_v5, 0.0 }
 0x2b1   : > { %465 = vadd.xlane.f32.xlu1 %v464_v6 }
 0x2b5   : > { %482 = vrot.lane.b32.xlu0 %v1223_v22, %s1068_s14 }
 0x2bc   : > { %v526_v7 = vpop.permute.xlu1 %525 }
 0x2bd   : > { %v531_v8 = vsel %vm487_vm2, %v526_v7, 0 }
 0x2be   : > { %540 = vmatpush.bf16.msrb.mxu3 %v531_v8 }
 0x2c2   : > { %626 = vmatpush.bf16.msra.mxu3 %v617_v36 }
 0x2c3   : > { %504 = vrot.lane.b32.xlu2 %v1220_v19, %s1068_s14 }
 0x2ca   : > { %546 = vrot.lane.b32.xlu1 %v1217_v14, %s1068_s14 }
 0x314   : > { %v463_v10 = vpop.xlane.xlu0 %462 }
 0x315   : > { %890 = vrcp.f32 %v463_v10 }
 0x316   : > { %v460_v9 = vpop.xlane.xlu2 %459 }
 0x317   : > { %892 = vrcp.f32 %v460_v9 }
 0x31b   : > { %v891_v12 = vpop.eup %890 }
 0x31c   : > { %v475_v16 = vmul.f32 %v891_v12, %v883_v58  ;;  %v881_v58 = vld [vmem:[%s1308_s4] ss:$0 sm:$0xff] }
 0x31d   : > { %v893_v13 = vpop.eup %892 }
 0x31e   : > { %v469_v11 = vpop.xlane.xlu2 %468  ;;  %v474_v17 = vmul.f32 %v893_v13, %v885_v61  ;;  %v479_v14 = vpack.c.bf16 %v475_v16, %v475_v16 }
 0x320   : > { %v478_v22 = vpack.c.bf16 %v474_v17, %v474_v17 }
 0x324   : > { %v466_v15 = vpop.xlane.xlu1 %465 }
 0x325   : > { %894 = vrcp.f32 %v466_v15 }
 0x326   : > { %v505_v18 = vpop.permute.xlu2 %504  ;;  %896 = vrcp.f32 %v469_v11 }
 0x327   : > { %v483_v20 = vpop.permute.xlu0 %482  ;;  %v510_v21 = vsel %vm487_vm2, %v505_v18, 0 }
 0x328   : > { %519 = vmatpush.bf16.msrb.mxu2 %v510_v21  ;;  %v489_v19 = vsel %vm487_vm2, %v483_v20, 0 }
 0x329   : > { %498 = vmatpush.bf16.msrb.mxu1 %v489_v19 }
 0x32b   : > { %v895_v23 = vpop.eup %894  ;;  %793 = vmatmul.msk.bf16.vlgmr.msrb.gmra.mxu2 %vm342_vm1, %v479_v14 }
 0x32c   : > { %v476_v24 = vmul.f32 %v895_v23, %v889_v5  ;;  %792 = vmatmul.msk.bf16.vlgmr.msrb.gmra.mxu1 %vm342_vm1, %v478_v22  ;;  %v897_v26 = vpop.eup %896  ;;  %604 = vmatpush.bf16.msra.mxu2 %v595_v32 }
 0x32d   : > { %v477_v27 = vmul.f32 %v897_v26, %v887_v3  ;;  %585 = vmatpush.bf16.msra.mxu1 %v576_v34 }
 0x32e   : > { %v480_v25 = vpack.c.bf16 %v476_v24, %v476_v24 }
 0x32f   : > { %v481_v30 = vpack.c.bf16 %v477_v27, %v477_v27 }
 0x330   : > { %794 = vmatmul.msk.bf16.vlgmr.msrb.gmra.mxu3 %vm342_vm1, %v480_v25 }
 0x33c   : > { %v547_v28 = vpop.permute.xlu1 %546 }
 0x33d   : > { %v552_v29 = vsel %vm487_vm2, %v547_v28, 0 }
 0x33e   : > { %561 = vmatpush.bf16.msra.mxu0 %v552_v29 }
 0x341   : > { %795 = vmatmul.msk.bf16.vlgmr.msra.gmra.mxu0 %vm342_vm1, %v481_v30 }
 0x342   : > { %649 = vmatpush.bf16.msrb.mxu0 %v640_v38 }
 0x3a9   : > { %v500_v39 = vpop.f32.mrf.mxu1 }
 0x3aa   : > { %v567_v40 = vpack.c.bf16 %v500_v39, %v500_v39 }
 0x3ac   : > { %797 = vmatmul.msk.bf16.vlgmr.msra.gmra.mxu2 %vm342_vm1, %v567_v40 }
 0x3ae   : > { %v521_v41 = vpop.f32.mrf.mxu2 }
 0x3af   : > { %v569_v42 = vpack.c.bf16 %v521_v41, %v521_v41 }
 0x3b1   : > { %v502_v43 = vpop.f32.mrf.mxu1  ;;  %796 = vmatmul.msk.bf16.vlgmr.msra.gmra.mxu1 %vm342_vm1, %v569_v42 }
 0x3b3   : > { %v542_v44 = vpop.f32.mrf.mxu3 }
 0x3b4   : > { %v610_v45 = vpack.c.bf16 %v542_v44, %v542_v44 }
 0x3b6   : > { %v523_v46 = vpop.f32.mrf.mxu2  ;;  %798 = vmatmul.msk.bf16.vlgmr.msra.gmra.mxu3 %vm342_vm1, %v610_v45 }
 0x3bb   : > { %v544_v47 = vpop.f32.mrf.mxu3 }
 0x3be   : > { %v563_v48 = vpop.f32.mrf.mxu0 }
 0x3bf   : > { %v633_v49 = vpack.c.bf16 %v563_v48, %v563_v48 }
 0x3c1   : > { %799 = vmatmul.msk.bf16.vlgmr.msrb.gmra.mxu0 %vm342_vm1, %v633_v49 }
 0x3c6   : > { %v565_v50 = vpop.f32.mrf.mxu0 }
 0x42e   : > { %v587_v51 = vpop.f32.mrf.mxu1 }
 0x42f   : > { %v606_v52 = vpop.f32.mrf.mxu2 }
 0x430   : > { %v607_v56 = vadd.f32 %v606_v52, %v587_v51 }
 0x436   : > { %v589_v53 = vpop.f32.mrf.mxu1 }
 0x437   : > { %v608_v54 = vpop.f32.mrf.mxu2 }
 0x439   : > { %v628_v55 = vpop.f32.mrf.mxu3 }
 0x43a   : > { %v632_v57 = vadd.f32 %v628_v55, %v607_v56 }
 0x43e   : > { %v651_v59 = vpop.f32.mrf.mxu0 }
 0x43f   : > { %v655_v60 = vadd.f32 %v651_v59, %v632_v57 }
 0x441   : > { %v660_v61 = vadd.f32 %v881_v58, %v655_v60  ;;  %v630_v62 = vpop.f32.mrf.mxu3 }
 0x443   : > { %661 = vst.msk [vmem:[%s274_s13] sm:$0xff] %vm298_vm0, %v660_v61 }
 0x444   : > { %1015 = shalt.err (!%p1012_p9)
}
 0x445   : > { %816 = dma.vmem_to_hbm [thread:$0]  (%p1168_p4), %s676_s26, 128, %s678_s8, %s663_s25  }
 0x446   : > { %v653_v63 = vpop.f32.mrf.mxu0 }
 0x447 PF: > { %s689_s22 = sand.u32 1, %s1046_s18   ;;  %p1316_p10 = scmp.ge.s32.totalorder %s1058_s21, 2 }
 0x448   : > { %s690_s28 = scalar_lea.sflag [#allocation4], %s689_s22 }
 0x449   : > { %p830_p13 = pnand %p1316_p10, %p1172_p6 }
 0x44b   : > { %p831_p11 = pneg %p830_p13 }
 0x44d   : > { %1041 = dma.done.wait (%p831_p11), %s690_s28, 128  }
 0x44e   : > { %1043 = vsyncadd (%p831_p11), %s690_s28, 4294967168  ;;  %p19_p0 = scmp.ge.s32.totalorder %s1142_s12, 4   ;;  %s1317_s18 = smov %s1050_s19 }
 0x44f   : > { %s1318_s19 = smov %s1054_s20  ;;  %s1319_s20 = smov %s1153_s15 }
 0x450   : > { %s1320_s21 = smov %s1142_s12  ;;  %21 = sbr.rel (!%p19_p0) target bundleno = 6 (0x6), region = 96 }
 0x455   :  { %696 = vsyncpa [#allocation3], 1 }
 0x456   :  { %698 = vsyncpa [#allocation3 + $0x1], 1 }
 0x457   :  { %699 = vsyncpa [#allocation6], 1 }
 0x458   :  { %700 = vsyncpa [#allocation4], 1 }
 0x459   :  { %702 = vsyncpa [#allocation4 + $0x1], 1 }

</bundles_post_ra>
